<compile_context>
chip_gen: v5e
topology: v5e:2x2
jax: 0.10.0
libtpu: 0.0.40
codegen_flags: <defaults>
</compile_context>

<pallas_src>
import functools

import jax
import jax.numpy as jnp
from jax import lax
from jax.experimental import pallas as pl
from jax.experimental.pallas import tpu as pltpu


def _round_up(x, m):
    return (x + m - 1) // m * m


def _double_conv_kernel(x_ref, w1_ref, b1_ref, w2_ref, b2_ref, o_ref,
                        buf1_ref, buf2_ref, *, H, W, top):
    """Fused DoubleConvWithDropout (eval mode) for one batch element.

    Internal layout: channels on sublanes, flattened H*W on lanes (lane-dense).

    x_ref  : (1, Cin,  H*W)   NCHW input, spatially flattened (free reshape)
    w1_ref : (Cout, 9*C1p)    conv1 weights, BN1 scale folded in, Cin zero-padded
    b1_ref : (Cout, 1)        folded BN1 bias
    w2_ref : (Cout, 9*C2p)    conv2 weights, BN2 scale folded in
    b2_ref : (Cout, 1)        folded BN2 bias
    o_ref  : (1, Cout, H*W)
    buf1_ref: (C1p, BUF) VMEM halo buffer for the input image
    buf2_ref: (C2p, BUF) VMEM halo buffer for the intermediate activation
    """
    HW = H * W
    cin = x_ref.shape[1]
    cout = o_ref.shape[1]

    # Column-edge masks for the horizontal taps. The vertical halo is handled by
    # the zero rows above/below the image inside the scratch buffers.
    col = lax.broadcasted_iota(jnp.int32, (1, HW), 1) % W
    not_left_edge = col != 0          # valid positions for a dx = -1 tap
    not_right_edge = col != (W - 1)   # valid positions for a dx = +1 tap

    def conv3x3_bn_relu(buf_ref, w_ref, b_ref):
        # Gather the 9 shifted taps as static lane-slices of the halo buffer and
        # build the im2col matrix (9*Cp, H*W); one deep-K MXU dot produces the
        # lane-dense (Cout, H*W) result directly in NCHW order.
        taps = []
        for sy in (-1, 0, 1):
            for sx in (-1, 0, 1):
                start = top + sy * W + sx
                patch = buf_ref[:, start:start + HW]          # (Cp, HW)
                if sx == -1:
                    patch = jnp.where(not_left_edge, patch, 0.0)
                elif sx == 1:
                    patch = jnp.where(not_right_edge, patch, 0.0)
                taps.append(patch)
        patches = jnp.concatenate(taps, axis=0)               # (9*Cp, HW)
        y = jnp.dot(w_ref[...], patches,
                    preferred_element_type=jnp.float32)       # (Cout, HW)
        return jnp.maximum(y + b_ref[...], 0.0)               # folded BN bias + ReLU

    # ---- conv1 + BN1 + ReLU -------------------------------------------------
    buf1_ref[...] = jnp.zeros_like(buf1_ref)                  # zero halo + pad rows
    buf1_ref[:cin, top:top + HW] = x_ref[0].astype(jnp.float32)
    h = conv3x3_bn_relu(buf1_ref, w1_ref, b1_ref)             # (Cout, HW), stays on-chip

    # ---- conv2 + BN2 + ReLU (intermediate never goes back to HBM) -----------
    buf2_ref[...] = jnp.zeros_like(buf2_ref)
    buf2_ref[:cout, top:top + HW] = h
    y = conv3x3_bn_relu(buf2_ref, w2_ref, b2_ref)

    # Dropout2d(p) is the identity in eval mode.
    o_ref[0] = y.astype(o_ref.dtype)


def double_conv_fused(x_nchw, wmat1, bias1, wmat2, bias2, *, H, W):
    """x_nchw: (N, Cin, H, W); returns (N, Cout, H, W). One pallas_call total."""
    N, Cin = x_nchw.shape[0], x_nchw.shape[1]
    Cout = wmat1.shape[0]
    HW = H * W
    C1p = wmat1.shape[1] // 9
    C2p = wmat2.shape[1] // 9

    # Halo-buffer geometry: image is stored at lane offset `top` (128-aligned so
    # the interior store is unmasked); zero lanes above/below provide the
    # vertical SAME padding.
    top = _round_up(W + 1, 128)
    buf_len = _round_up(top + HW + W + 1, 128)

    x_flat = x_nchw.reshape(N, Cin, HW)   # NCHW is channel-major: free bitcast

    kernel = functools.partial(_double_conv_kernel, H=H, W=W, top=top)

    out = pl.pallas_call(
        kernel,
        out_shape=jax.ShapeDtypeStruct((N, Cout, HW), jnp.float32),
        grid_spec=pltpu.PrefetchScalarGridSpec(
            num_scalar_prefetch=0,
            grid=(N,),
            in_specs=[
                pl.BlockSpec((1, Cin, HW), lambda n: (n, 0, 0)),
                pl.BlockSpec((Cout, 9 * C1p), lambda n: (0, 0)),
                pl.BlockSpec((Cout, 1), lambda n: (0, 0)),
                pl.BlockSpec((Cout, 9 * C2p), lambda n: (0, 0)),
                pl.BlockSpec((Cout, 1), lambda n: (0, 0)),
            ],
            out_specs=pl.BlockSpec((1, Cout, HW), lambda n: (n, 0, 0)),
            scratch_shapes=[
                pltpu.VMEM((C1p, buf_len), jnp.float32),
                pltpu.VMEM((C2p, buf_len), jnp.float32),
            ],
        ),
        compiler_params=pltpu.CompilerParams(
            dimension_semantics=("parallel",)),
    )(x_flat, wmat1, bias1, wmat2, bias2)

    return out.reshape(N, Cout, H, W)


def _fold_conv_bn_params(w_oihw, gamma, beta, mean, var, eps=1e-5):
    """OIHW conv weight + eval-mode BatchNorm -> (Cout, 9*Cpad) matmul weight
    (BN scale folded in, input channels zero-padded to a multiple of 8) and a
    (Cout, 1) folded bias."""
    cout, cin, kh, kw = w_oihw.shape
    cpad = _round_up(cin, 8)
    scale = gamma / jnp.sqrt(var + eps)
    bias = beta - mean * scale
    w = jnp.transpose(w_oihw, (0, 2, 3, 1))                       # (Cout, 3, 3, Cin)
    w = jnp.pad(w, ((0, 0), (0, 0), (0, 0), (0, cpad - cin)))     # pad channel dim
    wmat = w.reshape(cout, kh * kw * cpad) * scale[:, None]       # fold BN scale
    return wmat.astype(jnp.float32), bias.reshape(cout, 1).astype(jnp.float32)


@jax.jit
def double_conv_with_dropout(x_nchw, params):
    """Forward pass of DoubleConvWithDropout (eval mode). NCHW in -> NCHW out.
    No layout transposes, no HBM pad pass, no HBM round-trip between convs."""
    (w1, g1, b1, m1, v1, w2, g2, b2, m2, v2) = params
    _, _, H, W = x_nchw.shape
    wmat1, bias1 = _fold_conv_bn_params(w1, g1, b1, m1, v1)
    wmat2, bias2 = _fold_conv_bn_params(w2, g2, b2, m2, v2)
    return double_conv_fused(x_nchw, wmat1, bias1, wmat2, bias2, H=H, W=W)


def _reference(x, params, eps=1e-5):
    """Pure-JAX reference: Conv3x3 -> BN(eval) -> ReLU, twice (dropout = id)."""
    (w1, g1, b1, m1, v1, w2, g2, b2, m2, v2) = params

    def block(h, w, g, b, m, v):
        y = lax.conv_general_dilated(
            h, w, window_strides=(1, 1), padding=((1, 1), (1, 1)),
            dimension_numbers=("NCHW", "OIHW", "NCHW"),
            precision=lax.Precision.HIGHEST)
        s = g / jnp.sqrt(v + eps)
        y = y * s[None, :, None, None] + (b - m * s)[None, :, None, None]
        return jnp.maximum(y, 0.0)

    h = block(x, w1, g1, b1, m1, v1)
    return block(h, w2, g2, b2, m2, v2)


if __name__ == "__main__":
    key = jax.random.PRNGKey(0)
    N, Cin, H, W = 2, 4, 16, 16
    Cout = 8

    ks = jax.random.split(key, 5)
    x = jax.random.normal(ks[0], (N, Cin, H, W), jnp.float32)

    # Deterministic synthetic parameters (shapes from nn.Conv2d / nn.BatchNorm2d).
    w1 = 0.1 * jax.random.normal(ks[1], (Cout, Cin, 3, 3), jnp.float32)   # OIHW
    w2 = 0.1 * jax.random.normal(ks[2], (Cout, Cout, 3, 3), jnp.float32)  # OIHW
    g1 = 1.0 + 0.05 * jax.random.normal(ks[3], (Cout,), jnp.float32)
    b1 = 0.05 * jax.random.normal(ks[4], (Cout,), jnp.float32)
    m1 = 0.1 * jnp.arange(Cout, dtype=jnp.float32)
    v1 = 1.0 + 0.01 * jnp.arange(Cout, dtype=jnp.float32)
    g2 = jnp.ones((Cout,), jnp.float32)
    b2 = jnp.zeros((Cout,), jnp.float32)
    m2 = jnp.zeros((Cout,), jnp.float32)
    v2 = jnp.ones((Cout,), jnp.float32)

    params = (w1, g1, b1, m1, v1, w2, g2, b2, m2, v2)

    out = double_conv_with_dropout(x, params)
    jax.block_until_ready(out)
    assert out.shape == (N, Cout, H, W), out.shape

    ref = _reference(x, params)
    max_err = float(jnp.max(jnp.abs(out - ref)))
    assert max_err < 5e-2, f"max abs error vs reference: {max_err}"

    print("KERNEL_OK")
</pallas_src>

<mosaic_0001>
module attributes {stable_mosaic.version = 11 : i64} {
  func.func @_double_conv_kernel(%arg0: i32, %arg1: memref<1x4x256xf32, #tpu.memory_space<vmem>>, %arg2: memref<8x72xf32, #tpu.memory_space<vmem>>, %arg3: memref<8x1xf32, #tpu.memory_space<vmem>>, %arg4: memref<8x72xf32, #tpu.memory_space<vmem>>, %arg5: memref<8x1xf32, #tpu.memory_space<vmem>>, %arg6: memref<1x8x256xf32, #tpu.memory_space<vmem>>, %arg7: memref<8x512xf32, #tpu.memory_space<vmem>>, %arg8: memref<8x512xf32, #tpu.memory_space<vmem>>) attributes {dimension_semantics = [#tpu.dimension_semantics<parallel>], iteration_bounds = array<i64: 2>, scalar_prefetch = 0 : i64, scratch_operands = 2 : i64, tpu.core_type = #tpu.core_type<tc>, window_params = [{transform_indices = @transform_0, window_bounds = array<i64: 1, 4, 256>}, {pipeline_mode = #tpu.pipeline_mode<synchronous>, transform_indices = @transform_1, window_bounds = array<i64: 8, 72>}, {pipeline_mode = #tpu.pipeline_mode<synchronous>, transform_indices = @transform_2, window_bounds = array<i64: 8, 1>}, {pipeline_mode = #tpu.pipeline_mode<synchronous>, transform_indices = @transform_3, window_bounds = array<i64: 8, 72>}, {pipeline_mode = #tpu.pipeline_mode<synchronous>, transform_indices = @transform_4, window_bounds = array<i64: 8, 1>}, {transform_indices = @transform_5, window_bounds = array<i64: 1, 8, 256>}]} {
    %0 = tpu.iota {dimensions = array<i32: 1>} : vector<1x256xi32>
    %c16_i32 = arith.constant 16 : i32
    %c0_i32 = arith.constant 0 : i32
    %1 = arith.cmpi eq, %c16_i32, %c0_i32 : i32
    %c1_i32 = arith.constant 1 : i32
    %2 = arith.select %1, %c1_i32, %c16_i32 : i32
    %3 = vector.broadcast %2 : i32 to vector<1x256xi32>
    %4 = arith.remsi %0, %3 : vector<1x256xi32>
    %c0_i32_0 = arith.constant 0 : i32
    %5 = vector.broadcast %c0_i32_0 : i32 to vector<1x256xi32>
    %6 = arith.cmpi ne, %4, %5 : vector<1x256xi32>
    %c0_i32_1 = arith.constant 0 : i32
    %7 = vector.broadcast %c0_i32_1 : i32 to vector<1x256xi32>
    %8 = arith.cmpi slt, %4, %7 : vector<1x256xi32>
    %c0_i32_2 = arith.constant 0 : i32
    %9 = arith.cmpi slt, %2, %c0_i32_2 : i32
    %10 = vector.broadcast %9 : i1 to vector<1x256xi1>
    %11 = vector.broadcast %10 : vector<1x256xi1> to vector<1x256xi1>
    %12 = arith.xori %8, %11 : vector<1x256xi1>
    %13 = arith.andi %12, %6 : vector<1x256xi1>
    %14 = vector.broadcast %2 : i32 to vector<1x256xi32>
    %15 = arith.addi %4, %14 : vector<1x256xi32>
    %16 = arith.select %13, %15, %4 : vector<1x256xi1>, vector<1x256xi32>
    %c0_i32_3 = arith.constant 0 : i32
    %17 = vector.broadcast %c0_i32_3 : i32 to vector<1x256xi32>
    %18 = arith.cmpi ne, %16, %17 : vector<1x256xi32>
    %c15_i32 = arith.constant 15 : i32
    %19 = vector.broadcast %c15_i32 : i32 to vector<1x256xi32>
    %20 = arith.cmpi ne, %16, %19 : vector<1x256xi32>
    %cst = arith.constant 0.000000e+00 : f32
    %21 = vector.broadcast %cst : f32 to vector<8x512xf32>
    %c0 = arith.constant 0 : index
    %c0_4 = arith.constant 0 : index
    %22 = vector.load %arg7[%c0, %c0_4] : memref<8x512xf32, #tpu.memory_space<vmem>>, vector<8x512xf32>
    tpu.vector_store %arg7[%c0, %c0_4], %21 {strides = array<i32>} : memref<8x512xf32, #tpu.memory_space<vmem>>, vector<8x512xf32>,
    %c0_5 = arith.constant 0 : index
    %c0_6 = arith.constant 0 : index
    %c0_7 = arith.constant 0 : index
    %23 = vector.load %arg1[%c0_5, %c0_6, %c0_7] : memref<1x4x256xf32, #tpu.memory_space<vmem>>, vector<1x4x256xf32>
    %24 = vector.shape_cast %23 : vector<1x4x256xf32> to vector<4x256xf32>
    %c0_8 = arith.constant 0 : index
    %c128 = arith.constant 128 : index
    %25 = vector.load %arg7[%c0_8, %c128] : memref<8x512xf32, #tpu.memory_space<vmem>>, vector<4x256xf32>
    tpu.vector_store %arg7[%c0_8, %c128], %24 {strides = array<i32>} : memref<8x512xf32, #tpu.memory_space<vmem>>, vector<4x256xf32>,
    %c0_9 = arith.constant 0 : index
    %c111 = arith.constant 111 : index
    %26 = vector.load %arg7[%c0_9, %c111] : memref<8x512xf32, #tpu.memory_space<vmem>>, vector<8x256xf32>
    %cst_10 = arith.constant 0.000000e+00 : f32
    %27 = vector.shape_cast %18 : vector<1x256xi1> to vector<1x256xi1>
    %28 = vector.broadcast %27 : vector<1x256xi1> to vector<8x256xi1>
    %29 = vector.broadcast %cst_10 : f32 to vector<8x256xf32>
    %30 = arith.select %28, %26, %29 : vector<8x256xi1>, vector<8x256xf32>
    %c0_11 = arith.constant 0 : index
    %c112 = arith.constant 112 : index
    %31 = vector.load %arg7[%c0_11, %c112] : memref<8x512xf32, #tpu.memory_space<vmem>>, vector<8x256xf32>
    %c0_12 = arith.constant 0 : index
    %c113 = arith.constant 113 : index
    %32 = vector.load %arg7[%c0_12, %c113] : memref<8x512xf32, #tpu.memory_space<vmem>>, vector<8x256xf32>
    %cst_13 = arith.constant 0.000000e+00 : f32
    %33 = vector.shape_cast %20 : vector<1x256xi1> to vector<1x256xi1>
    %34 = vector.broadcast %33 : vector<1x256xi1> to vector<8x256xi1>
    %35 = vector.broadcast %cst_13 : f32 to vector<8x256xf32>
    %36 = arith.select %34, %32, %35 : vector<8x256xi1>, vector<8x256xf32>
    %c0_14 = arith.constant 0 : index
    %c127 = arith.constant 127 : index
    %37 = vector.load %arg7[%c0_14, %c127] : memref<8x512xf32, #tpu.memory_space<vmem>>, vector<8x256xf32>
    %cst_15 = arith.constant 0.000000e+00 : f32
    %38 = vector.shape_cast %18 : vector<1x256xi1> to vector<1x256xi1>
    %39 = vector.broadcast %38 : vector<1x256xi1> to vector<8x256xi1>
    %40 = vector.broadcast %cst_15 : f32 to vector<8x256xf32>
    %41 = arith.select %39, %37, %40 : vector<8x256xi1>, vector<8x256xf32>
    %c0_16 = arith.constant 0 : index
    %c128_17 = arith.constant 128 : index
    %42 = vector.load %arg7[%c0_16, %c128_17] : memref<8x512xf32, #tpu.memory_space<vmem>>, vector<8x256xf32>
    %c0_18 = arith.constant 0 : index
    %c129 = arith.constant 129 : index
    %43 = vector.load %arg7[%c0_18, %c129] : memref<8x512xf32, #tpu.memory_space<vmem>>, vector<8x256xf32>
    %cst_19 = arith.constant 0.000000e+00 : f32
    %44 = vector.shape_cast %20 : vector<1x256xi1> to vector<1x256xi1>
    %45 = vector.broadcast %44 : vector<1x256xi1> to vector<8x256xi1>
    %46 = vector.broadcast %cst_19 : f32 to vector<8x256xf32>
    %47 = arith.select %45, %43, %46 : vector<8x256xi1>, vector<8x256xf32>
    %c0_20 = arith.constant 0 : index
    %c143 = arith.constant 143 : index
    %48 = vector.load %arg7[%c0_20, %c143] : memref<8x512xf32, #tpu.memory_space<vmem>>, vector<8x256xf32>
    %cst_21 = arith.constant 0.000000e+00 : f32
    %49 = vector.shape_cast %18 : vector<1x256xi1> to vector<1x256xi1>
    %50 = vector.broadcast %49 : vector<1x256xi1> to vector<8x256xi1>
    %51 = vector.broadcast %cst_21 : f32 to vector<8x256xf32>
    %52 = arith.select %50, %48, %51 : vector<8x256xi1>, vector<8x256xf32>
    %c0_22 = arith.constant 0 : index
    %c144 = arith.constant 144 : index
    %53 = vector.load %arg7[%c0_22, %c144] : memref<8x512xf32, #tpu.memory_space<vmem>>, vector<8x256xf32>
    %c0_23 = arith.constant 0 : index
    %c145 = arith.constant 145 : index
    %54 = vector.load %arg7[%c0_23, %c145] : memref<8x512xf32, #tpu.memory_space<vmem>>, vector<8x256xf32>
    %cst_24 = arith.constant 0.000000e+00 : f32
    %55 = vector.shape_cast %20 : vector<1x256xi1> to vector<1x256xi1>
    %56 = vector.broadcast %55 : vector<1x256xi1> to vector<8x256xi1>
    %57 = vector.broadcast %cst_24 : f32 to vector<8x256xf32>
    %58 = arith.select %56, %54, %57 : vector<8x256xi1>, vector<8x256xf32>
    %59 = tpu.concatenate %30, %31, %36, %41, %42, %47, %52, %53, %58 in 0 : vector<8x256xf32>, vector<8x256xf32>, vector<8x256xf32>, vector<8x256xf32>, vector<8x256xf32>, vector<8x256xf32>, vector<8x256xf32>, vector<8x256xf32>, vector<8x256xf32> -> vector<72x256xf32>
    %c0_25 = arith.constant 0 : index
    %c0_26 = arith.constant 0 : index
    %60 = vector.load %arg2[%c0_25, %c0_26] : memref<8x72xf32, #tpu.memory_space<vmem>>, vector<8x72xf32>
    %cst_27 = arith.constant dense<0.000000e+00> : vector<8x256xf32>
    %61 = tpu.matmul %60, %59, %cst_27 {dimension_numbers = #tpu.dot_dimension_numbers<[1], [0], [0], [1], [0, 0, 1, 1], [], []>} : vector<8x72xf32>, vector<72x256xf32>, vector<8x256xf32> -> vector<8x256xf32>
    %c0_28 = arith.constant 0 : index
    %c0_29 = arith.constant 0 : index
    %62 = vector.load %arg3[%c0_28, %c0_29] : memref<8x1xf32, #tpu.memory_space<vmem>>, vector<8x1xf32>
    %63 = vector.broadcast %62 : vector<8x1xf32> to vector<8x256xf32>
    %64 = arith.addf %61, %63 : vector<8x256xf32>
    %cst_30 = arith.constant 0.000000e+00 : f32
    %65 = vector.broadcast %cst_30 : f32 to vector<8x256xf32>
    %66 = arith.maximumf %64, %65 : vector<8x256xf32>
    %cst_31 = arith.constant 0.000000e+00 : f32
    %67 = vector.broadcast %cst_31 : f32 to vector<8x512xf32>
    %c0_32 = arith.constant 0 : index
    %c0_33 = arith.constant 0 : index
    %68 = vector.load %arg8[%c0_32, %c0_33] : memref<8x512xf32, #tpu.memory_space<vmem>>, vector<8x512xf32>
    tpu.vector_store %arg8[%c0_32, %c0_33], %67 {strides = array<i32>} : memref<8x512xf32, #tpu.memory_space<vmem>>, vector<8x512xf32>,
    %c0_34 = arith.constant 0 : index
    %c128_35 = arith.constant 128 : index
    %69 = vector.load %arg8[%c0_34, %c128_35] : memref<8x512xf32, #tpu.memory_space<vmem>>, vector<8x256xf32>
    tpu.vector_store %arg8[%c0_34, %c128_35], %66 {strides = array<i32>} : memref<8x512xf32, #tpu.memory_space<vmem>>, vector<8x256xf32>,
    %c0_36 = arith.constant 0 : index
    %c111_37 = arith.constant 111 : index
    %70 = vector.load %arg8[%c0_36, %c111_37] : memref<8x512xf32, #tpu.memory_space<vmem>>, vector<8x256xf32>
    %cst_38 = arith.constant 0.000000e+00 : f32
    %71 = vector.shape_cast %18 : vector<1x256xi1> to vector<1x256xi1>
    %72 = vector.broadcast %71 : vector<1x256xi1> to vector<8x256xi1>
    %73 = vector.broadcast %cst_38 : f32 to vector<8x256xf32>
    %74 = arith.select %72, %70, %73 : vector<8x256xi1>, vector<8x256xf32>
    %c0_39 = arith.constant 0 : index
    %c112_40 = arith.constant 112 : index
    %75 = vector.load %arg8[%c0_39, %c112_40] : memref<8x512xf32, #tpu.memory_space<vmem>>, vector<8x256xf32>
    %c0_41 = arith.constant 0 : index
    %c113_42 = arith.constant 113 : index
    %76 = vector.load %arg8[%c0_41, %c113_42] : memref<8x512xf32, #tpu.memory_space<vmem>>, vector<8x256xf32>
    %cst_43 = arith.constant 0.000000e+00 : f32
    %77 = vector.shape_cast %20 : vector<1x256xi1> to vector<1x256xi1>
    %78 = vector.broadcast %77 : vector<1x256xi1> to vector<8x256xi1>
    %79 = vector.broadcast %cst_43 : f32 to vector<8x256xf32>
    %80 = arith.select %78, %76, %79 : vector<8x256xi1>, vector<8x256xf32>
    %c0_44 = arith.constant 0 : index
    %c127_45 = arith.constant 127 : index
    %81 = vector.load %arg8[%c0_44, %c127_45] : memref<8x512xf32, #tpu.memory_space<vmem>>, vector<8x256xf32>
    %cst_46 = arith.constant 0.000000e+00 : f32
    %82 = vector.shape_cast %18 : vector<1x256xi1> to vector<1x256xi1>
    %83 = vector.broadcast %82 : vector<1x256xi1> to vector<8x256xi1>
    %84 = vector.broadcast %cst_46 : f32 to vector<8x256xf32>
    %85 = arith.select %83, %81, %84 : vector<8x256xi1>, vector<8x256xf32>
    %c0_47 = arith.constant 0 : index
    %c128_48 = arith.constant 128 : index
    %86 = vector.load %arg8[%c0_47, %c128_48] : memref<8x512xf32, #tpu.memory_space<vmem>>, vector<8x256xf32>
    %c0_49 = arith.constant 0 : index
    %c129_50 = arith.constant 129 : index
    %87 = vector.load %arg8[%c0_49, %c129_50] : memref<8x512xf32, #tpu.memory_space<vmem>>, vector<8x256xf32>
    %cst_51 = arith.constant 0.000000e+00 : f32
    %88 = vector.shape_cast %20 : vector<1x256xi1> to vector<1x256xi1>
    %89 = vector.broadcast %88 : vector<1x256xi1> to vector<8x256xi1>
    %90 = vector.broadcast %cst_51 : f32 to vector<8x256xf32>
    %91 = arith.select %89, %87, %90 : vector<8x256xi1>, vector<8x256xf32>
    %c0_52 = arith.constant 0 : index
    %c143_53 = arith.constant 143 : index
    %92 = vector.load %arg8[%c0_52, %c143_53] : memref<8x512xf32, #tpu.memory_space<vmem>>, vector<8x256xf32>
    %cst_54 = arith.constant 0.000000e+00 : f32
    %93 = vector.shape_cast %18 : vector<1x256xi1> to vector<1x256xi1>
    %94 = vector.broadcast %93 : vector<1x256xi1> to vector<8x256xi1>
    %95 = vector.broadcast %cst_54 : f32 to vector<8x256xf32>
    %96 = arith.select %94, %92, %95 : vector<8x256xi1>, vector<8x256xf32>
    %c0_55 = arith.constant 0 : index
    %c144_56 = arith.constant 144 : index
    %97 = vector.load %arg8[%c0_55, %c144_56] : memref<8x512xf32, #tpu.memory_space<vmem>>, vector<8x256xf32>
    %c0_57 = arith.constant 0 : index
    %c145_58 = arith.constant 145 : index
    %98 = vector.load %arg8[%c0_57, %c145_58] : memref<8x512xf32, #tpu.memory_space<vmem>>, vector<8x256xf32>
    %cst_59 = arith.constant 0.000000e+00 : f32
    %99 = vector.shape_cast %20 : vector<1x256xi1> to vector<1x256xi1>
    %100 = vector.broadcast %99 : vector<1x256xi1> to vector<8x256xi1>
    %101 = vector.broadcast %cst_59 : f32 to vector<8x256xf32>
    %102 = arith.select %100, %98, %101 : vector<8x256xi1>, vector<8x256xf32>
    %103 = tpu.concatenate %74, %75, %80, %85, %86, %91, %96, %97, %102 in 0 : vector<8x256xf32>, vector<8x256xf32>, vector<8x256xf32>, vector<8x256xf32>, vector<8x256xf32>, vector<8x256xf32>, vector<8x256xf32>, vector<8x256xf32>, vector<8x256xf32> -> vector<72x256xf32>
    %c0_60 = arith.constant 0 : index
    %c0_61 = arith.constant 0 : index
    %104 = vector.load %arg4[%c0_60, %c0_61] : memref<8x72xf32, #tpu.memory_space<vmem>>, vector<8x72xf32>
    %cst_62 = arith.constant dense<0.000000e+00> : vector<8x256xf32>
    %105 = tpu.matmul %104, %103, %cst_62 {dimension_numbers = #tpu.dot_dimension_numbers<[1], [0], [0], [1], [0, 0, 1, 1], [], []>} : vector<8x72xf32>, vector<72x256xf32>, vector<8x256xf32> -> vector<8x256xf32>
    %c0_63 = arith.constant 0 : index
    %c0_64 = arith.constant 0 : index
    %106 = vector.load %arg5[%c0_63, %c0_64] : memref<8x1xf32, #tpu.memory_space<vmem>>, vector<8x1xf32>
    %107 = vector.broadcast %106 : vector<8x1xf32> to vector<8x256xf32>
    %108 = arith.addf %105, %107 : vector<8x256xf32>
    %cst_65 = arith.constant 0.000000e+00 : f32
    %109 = vector.broadcast %cst_65 : f32 to vector<8x256xf32>
    %110 = arith.maximumf %108, %109 : vector<8x256xf32>
    %c0_66 = arith.constant 0 : index
    %c0_67 = arith.constant 0 : index
    %c0_68 = arith.constant 0 : index
    %111 = vector.load %arg6[%c0_66, %c0_67, %c0_68] : memref<1x8x256xf32, #tpu.memory_space<vmem>>, vector<1x8x256xf32>
    %112 = vector.shape_cast %111 : vector<1x8x256xf32> to vector<8x256xf32>
    %113 = vector.shape_cast %110 : vector<8x256xf32> to vector<1x8x256xf32>
    tpu.vector_store %arg6[%c0_66, %c0_67, %c0_68], %113 {strides = array<i32>} : memref<1x8x256xf32, #tpu.memory_space<vmem>>, vector<1x8x256xf32>,
    return
  }
  func.func @transform_0(%arg0: i32) -> (i32, i32, i32) {
    %c0_i32 = arith.constant 0 : i32
    %c0_i32_0 = arith.constant 0 : i32
    %c0_i32_1 = arith.constant 0 : i32
    return %arg0, %c0_i32, %c0_i32_0 : i32, i32, i32
  }
  func.func @transform_1(%arg0: i32) -> (i32, i32) {
    %c0_i32 = arith.constant 0 : i32
    %c0_i32_0 = arith.constant 0 : i32
    %c0_i32_1 = arith.constant 0 : i32
    return %c0_i32, %c0_i32_0 : i32, i32
  }
  func.func @transform_2(%arg0: i32) -> (i32, i32) {
    %c0_i32 = arith.constant 0 : i32
    %c0_i32_0 = arith.constant 0 : i32
    %c0_i32_1 = arith.constant 0 : i32
    return %c0_i32, %c0_i32_0 : i32, i32
  }
  func.func @transform_3(%arg0: i32) -> (i32, i32) {
    %c0_i32 = arith.constant 0 : i32
    %c0_i32_0 = arith.constant 0 : i32
    %c0_i32_1 = arith.constant 0 : i32
    return %c0_i32, %c0_i32_0 : i32, i32
  }
  func.func @transform_4(%arg0: i32) -> (i32, i32) {
    %c0_i32 = arith.constant 0 : i32
    %c0_i32_0 = arith.constant 0 : i32
    %c0_i32_1 = arith.constant 0 : i32
    return %c0_i32, %c0_i32_0 : i32, i32
  }
  func.func @transform_5(%arg0: i32) -> (i32, i32, i32) {
    %c0_i32 = arith.constant 0 : i32
    %c0_i32_0 = arith.constant 0 : i32
    %c0_i32_1 = arith.constant 0 : i32
    return %arg0, %c0_i32, %c0_i32_0 : i32, i32, i32
  }
}

</mosaic_0001>

<bundles_post_ra>
// kernel: double_conv_with_dropout.1
= control target key start
LH: loop header
LB: loop body
LE: loop exit
PB: predicated region body
PF: predicated region fallthrough
CT: control target
= control target key end

     0   :  { %s790_s18 = smov 0   ;;  %s1007_s0 = inlined_call_operand.vmem [shape: f32[2,4,256], index: 0, kind: input, shape index: {}]   ;;  %s1008_s1 = inlined_call_operand.vmem [shape: f32[8,72], index: 1, kind: input, shape index: {}]   ;;  %s1009_s2 = inlined_call_operand.vmem [shape: f32[8,1], index: 2, kind: input, shape index: {}]   ;;  %s1010_s3 = inlined_call_operand.vmem [shape: f32[8,72], index: 3, kind: input, shape index: {}]   ;;  %s1011_s4 = inlined_call_operand.vmem [shape: f32[8,1], index: 4, kind: input, shape index: {}]   ;;  %s1012_s5 = inlined_call_operand.vmem [shape: f32[2,8,256], index: 5, kind: output, shape index: {}]  }
   0x1 LB: > { %s661_s19 = sadd.s32 4294967295, %s748_s18   ;;  %p665_p0 = scmp.ge.s32.totalorder %s748_s18, 1  ;;  %s748_s18 = sphi %s790_s18, %s15_s18  }
   0x2   : > { %p187_p1 = scmp.lt.s32.totalorder %s748_s18, 3 }
   0x4   : > { %p188_p2 = pnand %p665_p0, %p187_p1 }
   0x5   : > { %s751_s20 = smov (!%p188_p2), 111   ;;  %p215_p3 = scmp.lt.s32.totalorder (!%p188_p2), %s661_s19, 1 }
   0x6   : > { %191 = sbr.rel (%p188_p2) target bundleno = 614 (0x266), region = 40  ;;  %s752_s21 = smov (!%p188_p2), 112  }
   0x7   : > { %s753_s26 = smov (!%p188_p2), 113   ;;  %s754_s27 = smov (!%p188_p2), 127  }
   0x8   : > { %s755_s28 = smov (!%p188_p2), 1   ;;  %s756_s29 = smov (!%p188_p2), 15  }
   0x9   : > { %s757_s30 = smov (!%p188_p2), 16   ;;  %s758_s6 = smov (!%p188_p2), 17  }
   0xb   : > { %v750_v0 = vmov 0.0   ;;  %s1022_s19 = smov (!%p215_p3, %s661_s19), 1  ;;  %v225_v11 = vlaneseq  ;;  %vm360_vm0 = vcmask 908288   ;;  %vm384_vm3 = vcmask 916480   ;;  %v390_v39 = vld [vmem:[%s1009_s2] sm:$0xff] }
   0xc   : > { %358 = vrot.lane.b32.xlu1 %v750_v0, %s751_s20  ;;  %382 = vrot.lane.b32.xlu2 %v750_v0, %s752_s21  ;;  %257 = vst [vmem:[#allocation2] sm:$0xff] %v750_v0  ;;  %s700_s22 = sshll.u32 %s1022_s19, 3  ;;  %vm347_vm4 = vcmask 924672   ;;  %vm334_vm7 = vcmask 1039360   ;;  %v759_v42 = vmov 0   ;;  %vm315_vm8 = vcmask 7168  }
   0xd   : > { %258 = vst [vmem:[#allocation2 + $0x18] sm:$0xff] %v750_v0  ;;  %s219_s25 = scalar_lea.vmem %s1007_s0, %s700_s22  ;;  %v226_v13 = vand.u32 127, %v225_v11  ;;  %730 = vset.pattern.permute.xlu1 %v759_v42  ;;  %741 = vset.pattern.permute.xlu0 %v759_v42  ;;  %vm302_vm9 = vcmask 121856   ;;  %vm373_vm10 = vcmask 130048   ;;  %vm285_vm11 = vcmask 138240   ;;  %v389_v57 = vld [vmem:[%s1008_s1] sm:$0xff] }
   0xe   : > { %v260_v1 = vld [vmem:[%s219_s25] sm:$0xff]  ;;  %vm396_vm12 = vcmask 588800   ;;  %s701_s15 = sshll.u32 %s1022_s19, 4 }
   0xf   : > { %262 = vst [vmem:[#allocation1] ss:$2 sm:$0xff] %v260_v1  ;;  %v227_v14 = vadd.s32 128, %v226_v13  ;;  %v232_v18 = vand.u32 15, %v226_v13  ;;  %v552_v22 = vld [vmem:[%s1010_s3] sm:$0xff] }
  0x11   : > { %v239_v19 = vand.u32 15, %v227_v14  ;;  %vm862_vm1 = vcmp.ne.s32.totalorder %v232_v18, 15  ;;  %vm878_vm5 = vcmp.ne.s32.totalorder %v232_v18, 0 }
  0x13   : > { %vm866_vm2 = vcmp.ne.s32.totalorder %v239_v19, 15  ;;  %vm882_vm6 = vcmp.ne.s32.totalorder %v239_v19, 0 }
  0x14   : > { %345 = vrot.lane.b32.xlu1 %v750_v0, %s753_s26 }
  0x16   : > { %v263_v2 = vld.sshfl [vmem:[#allocation1] sm:$0xff pattern:$0x75316420]  ;;  %v264_v3 = vld.sshfl [vmem:[#allocation1 + $0x8] sm:$0xff pattern:$0x75316420] }
  0x17   : > { %267 = vst [vmem:[#allocation2] sm:$0xf] %v263_v2 }
  0x18   : > { %268 = vst [vmem:[#allocation2 + $0x18] sm:$0xf] %v264_v3 }
  0x1e   : > { %v812_v4 = vld [vmem:[#allocation2] sm:$0xff] }
  0x1f   : > { %354 = vrot.lane.b32.xlu0 %v812_v4, %s751_s20  ;;  %v816_v5 = vld [vmem:[#allocation2 + $0x18] sm:$0xff]  ;;  %341 = vrot.lane.b32.xlu2 %v812_v4, %s753_s26  ;;  %v725_v7 = vpack.i.bf16 %v812_v4, %v750_v0 }
  0x20   : > { %v720_v6 = vpack.i.bf16 %v816_v5, %v812_v4 }
  0x22   : > { %721 = vrot.lane.b32.xlu1 %v720_v6, %s752_s21 }
  0x27   : > { %356 = vrot.lane.b32.xlu0 %v816_v5, %s751_s20  ;;  %328 = vrot.lane.b32.xlu2 %v812_v4, %s754_s27 }
  0x2a   : > { %332 = vrot.lane.b32.xlu1 %v750_v0, %s754_s27 }
  0x2f   : > { %343 = vrot.lane.b32.xlu0 %v816_v5, %s753_s26  ;;  %309 = vrot.lane.b32.xlu2 %v750_v0, %s755_s28 }
  0x32   : > { %313 = vrot.lane.b32.xlu1 %v816_v5, %s755_s28 }
  0x37   : > { %330 = vrot.lane.b32.xlu0 %v816_v5, %s754_s27  ;;  %296 = vrot.lane.b32.xlu2 %v750_v0, %s756_s29 }
  0x3a   : > { %300 = vrot.lane.b32.xlu1 %v816_v5, %s756_s29 }
  0x3f   : > { %311 = vrot.lane.b32.xlu0 %v812_v4, %s755_s28  ;;  %726 = vrot.lane.b32.xlu2 %v725_v7, %s757_s30 }
  0x42   : > { %279 = vrot.lane.b32.xlu1 %v750_v0, %s758_s6 }
  0x47   : > { %298 = vrot.lane.b32.xlu0 %v812_v4, %s756_s29  ;;  %281 = vrot.lane.b32.xlu2 %v812_v4, %s758_s6 }
  0x4a   : > { %393 = vperm.xlu1 %730, %v390_v39  }
  0x4f   : > { %371 = vrot.lane.b32.xlu0 %v816_v5, %s757_s30 }
  0x52   : > { %524 = vrot.lane.b32.xlu1 %v750_v0, %s751_s20 }
  0x57   : > { %283 = vrot.lane.b32.xlu0 %v816_v5, %s758_s6 }
  0x5a   : > { %478 = vrot.lane.b32.xlu1 %v750_v0, %s755_s28 }
  0x5f   : > { %546 = vrot.lane.b32.xlu0 %v750_v0, %s752_s21 }
  0x62   : > { %466 = vrot.lane.b32.xlu1 %v750_v0, %s756_s29 }
  0x66   : > { %v383_v8 = vpop.permute.xlu2 %382 }
  0x67   : > { %512 = vrot.lane.b32.xlu0 %v750_v0, %s753_s26 }
  0x6f   : > { %500 = vrot.lane.b32.xlu0 %v750_v0, %s754_s27 }
  0x79   : > { %v342_v10 = vpop.permute.xlu2 %341 }
  0x7e   : > { %v359_v9 = vpop.permute.xlu1 %358 }
  0x81   : > { %v329_v15 = vpop.permute.xlu2 %328 }
  0x86   : > { %v346_v12 = vpop.permute.xlu1 %345 }
  0x89   : > { %v310_v28 = vpop.permute.xlu2 %309 }
  0x91   : > { %v355_v16 = vpop.permute.xlu0 %354  ;;  %v297_v36 = vpop.permute.xlu2 %296 }
  0x94   : > { %v722_v17 = vpop.permute.xlu1 %721 }
  0x95   : > { %v723_v20 = vunpack.i.l.bf16 %v722_v17  ;;  %v724_v21 = vunpack.i.h.bf16 %v722_v17 }
  0x97   : > { %v385_v27 = vsel %vm384_vm3, %v723_v20, %v724_v21  ;;  %v386_v29 = vsel %vm384_vm3, %v724_v21, %v383_v8 }
  0x99   : > { %v357_v24 = vpop.permute.xlu0 %356  ;;  %v727_v43 = vpop.permute.xlu2 %726 }
  0x9a   : > { %v361_v25 = vsel %vm360_vm0, %v355_v16, %v357_v24  ;;  %v362_v26 = vsel %vm360_vm0, %v357_v24, %v359_v9  ;;  %v729_v48 = vunpack.i.h.bf16 %v727_v43  ;;  %v728_v49 = vunpack.i.l.bf16 %v727_v43 }
  0x9b   : > { %670 = vmatpush.msk.msra.mxu0 %vm862_vm1, %v361_v25  ;;  %677 = vmatpush.msk.msra.mxu1 %vm866_vm2, %v362_v26 }
  0x9c   : > { %v333_v30 = vpop.permute.xlu1 %332  ;;  %v374_v55 = vsel %vm373_vm10, %v728_v49, %v729_v48 }
  0x9d   : > { %428 = vmatpush.msra.mxu1 %v386_v29  ;;  %408 = vmatpush.msra.mxu0 %v385_v27 }
  0xa1   : > { %v344_v33 = vpop.permute.xlu0 %343  ;;  %v282_v50 = vpop.permute.xlu2 %281 }
  0xa2   : > { %v348_v34 = vsel %vm347_vm4, %v342_v10, %v344_v33  ;;  %v349_v35 = vsel %vm347_vm4, %v344_v33, %v346_v12 }
  0xa3   : > { %671 = vmatpush.msk.msra.mxu0 %vm878_vm5, %v348_v34  ;;  %678 = vmatpush.msk.msra.mxu1 %vm882_vm6, %v349_v35 }
  0xa4   : > { %v314_v37 = vpop.permute.xlu1 %313 }
  0xa9   : > { %v331_v38 = vpop.permute.xlu0 %330 }
  0xaa   : > { %v335_v40 = vsel %vm334_vm7, %v329_v15, %v331_v38  ;;  %v336_v41 = vsel %vm334_vm7, %v331_v38, %v333_v30 }
  0xab   : > { %672 = vmatpush.msk.msra.mxu0 %vm862_vm1, %v335_v40  ;;  %679 = vmatpush.msk.msra.mxu1 %vm866_vm2, %v336_v41 }
  0xac   : > { %v301_v44 = vpop.permute.xlu1 %300 }
  0xad   : > { %431 = vmatpush.msra.mxu1 %v816_v5  ;;  %411 = vmatpush.msra.mxu0 %v812_v4 }
  0xb1   : > { %v312_v45 = vpop.permute.xlu0 %311 }
  0xb2   : > { %v316_v46 = vsel %vm315_vm8, %v310_v28, %v312_v45  ;;  %v317_v47 = vsel %vm315_vm8, %v312_v45, %v314_v37 }
  0xb3   : > { %673 = vmatpush.msk.msra.mxu0 %vm878_vm5, %v316_v46  ;;  %680 = vmatpush.msk.msra.mxu1 %vm882_vm6, %v317_v47 }
  0xb4   : > { %v280_v52 = vpop.permute.xlu1 %279 }
  0xb5   : > { %v286_v56 = vsel %vm285_vm11, %v280_v52, %v282_v50 }
  0xb9   : > { %v299_v51 = vpop.permute.xlu0 %298 }
  0xba   : > { %v303_v53 = vsel %vm302_vm9, %v297_v36, %v299_v51  ;;  %v304_v54 = vsel %vm302_vm9, %v299_v51, %v301_v44 }
  0xbb   : > { %674 = vmatpush.msk.msra.mxu0 %vm862_vm1, %v303_v53  ;;  %681 = vmatpush.msk.msra.mxu1 %vm866_vm2, %v304_v54 }
  0xbc   : > { %v394_v62 = vpop.permute.xlu1 %393 }
  0xbd   : > { %414 = vmatpush.msra.mxu0 %v374_v55 }
  0xbf   : > { %675 = vmatpush.msk.msra.mxu0 %vm878_vm5, %v286_v56 }
  0xc0   : > { %676 = vmatmul.msk.f32.vlgmr.msra.gmra.mxu0 %vm396_vm12, %v389_v57 }
  0xc1   : > { %v372_v58 = vpop.permute.xlu0 %371 }
  0xc2   : > { %v375_v59 = vsel %vm373_vm10, %v729_v48, %v372_v58 }
  0xc3   : > { %434 = vmatpush.msra.mxu1 %v375_v59 }
  0xc4   : > { %v525_v8 = vpop.permute.xlu1 %524 }
  0xc9   : > { %v284_v60 = vpop.permute.xlu0 %283 }
  0xca   : > { %v287_v61 = vsel %vm285_vm11, %v282_v50, %v284_v60 }
  0xcb   : > { %682 = vmatpush.msk.msra.mxu1 %vm882_vm6, %v287_v61 }
  0xcc   : > { %683 = vmatmul.msk.f32.vlgmr.msra.gmra.mxu1 %vm396_vm12, %v389_v57  ;;  %v479_v10 = vpop.permute.xlu1 %478 }
  0xd1   : > { %v547_v11 = vpop.permute.xlu0 %546 }
  0xd4   : > { %v467_v13 = vpop.permute.xlu1 %466 }
  0xd9   : > { %v513_v14 = vpop.permute.xlu0 %512 }
  0xe1   : > { %v501_v17 = vpop.permute.xlu0 %500 }
 0x13d   : > { %v417_v63 = vpop.f32.mrf.mxu0 }
 0x13e   : > { %v418_v1 = vadd.f32 %v417_v63, %v394_v62 }
 0x140   : > { %v440_v2 = vmax.f32 %v418_v1, 0.0 }
 0x142   : > { %508 = vrot.lane.b32.xlu1 %v440_v2, %s753_s26  ;;  %520 = vrot.lane.b32.xlu2 %v440_v2, %s751_s20  ;;  %v736_v7 = vpack.i.bf16 %v440_v2, %v750_v0 }
 0x149   : > { %v437_v3 = vpop.f32.mrf.mxu1 }
 0x14a   : > { %v438_v4 = vadd.f32 %v437_v3, %v394_v62  ;;  %496 = vrot.lane.b32.xlu1 %v440_v2, %s754_s27 }
 0x14c   : > { %v441_v5 = vmax.f32 %v438_v4, 0.0 }
 0x14e   : > { %522 = vrot.lane.b32.xlu0 %v441_v5, %s751_s20  ;;  %v731_v6 = vpack.i.bf16 %v441_v5, %v440_v2  ;;  %s224_s20 = scalar_lea.vmem %s1012_s5, %s701_s15 }
 0x150   : > { %732 = vrot.lane.b32.xlu2 %v731_v6, %s752_s21 }
 0x152   : > { %737 = vrot.lane.b32.xlu1 %v736_v7, %s757_s30 }
 0x156   : > { %482 = vrot.lane.b32.xlu0 %v441_v5, %s755_s28 }
 0x158   : > { %510 = vrot.lane.b32.xlu2 %v441_v5, %s753_s26 }
 0x15a   : > { %456 = vrot.lane.b32.xlu1 %v440_v2, %s758_s6 }
 0x15e   : > { %470 = vrot.lane.b32.xlu0 %v441_v5, %s756_s29 }
 0x160   : > { %498 = vrot.lane.b32.xlu2 %v441_v5, %s754_s27 }
 0x166   : > { %454 = vrot.lane.b32.xlu0 %v750_v0, %s758_s6  ;;  %v553_v0 = vld [vmem:[%s1011_s4] sm:$0xff] }
 0x168   : > { %480 = vrot.lane.b32.xlu2 %v440_v2, %s755_s28 }
 0x16e   : > { %556 = vperm.xlu0 %741, %v553_v0  }
 0x170   : > { %468 = vrot.lane.b32.xlu2 %v440_v2, %s756_s29 }
 0x178   : > { %536 = vrot.lane.b32.xlu2 %v441_v5, %s757_s30 }
 0x180   : > { %458 = vrot.lane.b32.xlu2 %v441_v5, %s758_s6 }
 0x19c   : > { %v521_v9 = vpop.permute.xlu2 %520 }
 0x1aa   : > { %v733_v12 = vpop.permute.xlu2 %732 }
 0x1ab   : > { %v735_v20 = vunpack.i.h.bf16 %v733_v12  ;;  %v734_v21 = vunpack.i.l.bf16 %v733_v12 }
 0x1ad   : > { %v548_v28 = vsel %vm384_vm3, %v734_v21, %v735_v20  ;;  %v549_v29 = vsel %vm384_vm3, %v735_v20, %v547_v11 }
 0x1b2   : > { %v511_v15 = vpop.permute.xlu2 %510 }
 0x1b3   : > { %v515_v33 = vsel %vm347_vm4, %v511_v15, %v513_v14 }
 0x1b4   : > { %v509_v16 = vpop.permute.xlu1 %508 }
 0x1b5   : > { %v514_v30 = vsel %vm347_vm4, %v509_v16, %v511_v15 }
 0x1ba   : > { %v499_v18 = vpop.permute.xlu2 %498 }
 0x1bb   : > { %v503_v35 = vsel %vm334_vm7, %v499_v18, %v501_v17 }
 0x1bc   : > { %v497_v19 = vpop.permute.xlu1 %496 }
 0x1bd   : > { %v502_v34 = vsel %vm334_vm7, %v497_v19, %v499_v18 }
 0x1c0   : > { %v523_v24 = vpop.permute.xlu0 %522 }
 0x1c1   : > { %v526_v25 = vsel %vm360_vm0, %v521_v9, %v523_v24  ;;  %v527_v26 = vsel %vm360_vm0, %v523_v24, %v525_v8 }
 0x1c2   : > { %684 = vmatpush.msk.msra.mxu2 %vm862_vm1, %v526_v25  ;;  %691 = vmatpush.msk.msra.mxu3 %vm866_vm2, %v527_v26  ;;  %v481_v27 = vpop.permute.xlu2 %480 }
 0x1c3   : > { %v484_v41 = vsel %vm315_vm8, %v479_v10, %v481_v27 }
 0x1c4   : > { %570 = vmatpush.msra.mxu2 %v548_v28  ;;  %590 = vmatpush.msra.mxu3 %v549_v29  ;;  %v738_v36 = vpop.permute.xlu1 %737 }
 0x1c5   : > { %v740_v39 = vunpack.i.h.bf16 %v738_v36  ;;  %v739_v40 = vunpack.i.l.bf16 %v738_v36 }
 0x1c6   : > { %685 = vmatpush.msk.msra.mxu2 %vm878_vm5, %v514_v30  ;;  %692 = vmatpush.msk.msra.mxu3 %vm882_vm6, %v515_v33 }
 0x1c7   : > { %v538_v44 = vsel %vm373_vm10, %v739_v40, %v740_v39 }
 0x1c8   : > { %v483_v37 = vpop.permute.xlu0 %482  ;;  %686 = vmatpush.msk.msra.mxu2 %vm862_vm1, %v502_v34  ;;  %693 = vmatpush.msk.msra.mxu3 %vm866_vm2, %v503_v35 }
 0x1c9   : > { %v485_v42 = vsel %vm315_vm8, %v481_v27, %v483_v37 }
 0x1ca   : > { %v469_v38 = vpop.permute.xlu2 %468  ;;  %573 = vmatpush.msra.mxu2 %v440_v2  ;;  %593 = vmatpush.msra.mxu3 %v441_v5 }
 0x1cb   : > { %v472_v43 = vsel %vm302_vm9, %v467_v13, %v469_v38 }
 0x1cc   : > { %687 = vmatpush.msk.msra.mxu2 %vm878_vm5, %v484_v41  ;;  %694 = vmatpush.msk.msra.mxu3 %vm882_vm6, %v485_v42  ;;  %v457_v49 = vpop.permute.xlu1 %456 }
 0x1ce   : > { %688 = vmatpush.msk.msra.mxu2 %vm862_vm1, %v472_v43 }
 0x1d0   : > { %v471_v45 = vpop.permute.xlu0 %470  ;;  %576 = vmatpush.msra.mxu2 %v538_v44 }
 0x1d1   : > { %v473_v46 = vsel %vm302_vm9, %v469_v38, %v471_v45 }
 0x1d2   : > { %v537_v47 = vpop.permute.xlu2 %536  ;;  %695 = vmatpush.msk.msra.mxu3 %vm866_vm2, %v473_v46 }
 0x1d3   : > { %v539_v48 = vsel %vm373_vm10, %v740_v39, %v537_v47 }
 0x1d4   : > { %596 = vmatpush.msra.mxu3 %v539_v48 }
 0x1d8   : > { %v455_v50 = vpop.permute.xlu0 %454 }
 0x1d9   : > { %v460_v51 = vsel %vm285_vm11, %v455_v50, %v457_v49 }
 0x1da   : > { %v459_v52 = vpop.permute.xlu2 %458  ;;  %689 = vmatpush.msk.msra.mxu2 %vm878_vm5, %v460_v51 }
 0x1db   : > { %v461_v53 = vsel %vm285_vm11, %v457_v49, %v459_v52  ;;  %690 = vmatmul.msk.f32.vlgmr.msra.gmra.mxu2 %vm396_vm12, %v552_v22 }
 0x1dc   : > { %696 = vmatpush.msk.msra.mxu3 %vm882_vm6, %v461_v53 }
 0x1dd   : > { %697 = vmatmul.msk.f32.vlgmr.msra.gmra.mxu3 %vm396_vm12, %v552_v22 }
 0x1e0   : > { %v557_v23 = vpop.permute.xlu0 %556 }
 0x25e   : > { %v579_v54 = vpop.f32.mrf.mxu2 }
 0x25f   : > { %v580_v55 = vadd.f32 %v579_v54, %v557_v23 }
 0x260   : > { %v599_v56 = vpop.f32.mrf.mxu3 }
 0x261   : > { %v602_v31 = vmax.f32 %v580_v55, 0.0  ;;  %v600_v57 = vadd.f32 %v599_v56, %v557_v23 }
 0x263   : > { %604 = vst [vmem:[%s224_s20] sm:$0xff] %v602_v31  ;;  %v603_v58 = vmax.f32 %v600_v57, 0.0 }
 0x265   : > { %605 = vst [vmem:[%s224_s20 + $0x8] sm:$0xff] %v603_v58 }
 0x266 PF: > { %s15_s18 = sadd.s32 1, %s748_s18  }
 0x267   : > { %p12_p4 = scmp.ge.s32.totalorder %s15_s18, 4  }
 0x269   :  { %14 = sbr.rel (!%p12_p4) target bundleno = 1 (0x1), region = 70 }

</bundles_post_ra>
